<compile_context>
chip_gen: v7x
topology: tpu7x:2x2x1
jax: 0.10.0
libtpu: 0.0.40
codegen_flags: <defaults>
</compile_context>

<pallas_src>
from functools import partial

import numpy as np
import jax
import jax.numpy as jnp
from jax.experimental import pallas as pl
from jax.experimental.pallas import tpu as pltpu


# ------------------------------ helpers -------------------------------------

def _round_up(x, m):
    return ((x + m - 1) // m) * m


def _pick_dim_tile(dim, preferred, align=128, min_tiles=1):
    """Pick an `align`-multiple tile <= preferred; pad dim to a multiple of it."""
    t = min(preferred, _round_up(max(dim, 1), align))
    if min_tiles > 1 and dim > align:
        # Keep at least `min_tiles` tiles so a "parallel" grid axis can be
        # sharded across the two v7x TensorCores.
        t = min(t, _round_up(-(-dim // min_tiles), align))
    t = max(t, align)
    padded = _round_up(max(dim, 1), t)
    return padded, t


def _pick_rows(n, preferred=512):
    """Row (M) padding + tile: multiples of 128 when n >= 128, else 16-aligned
    (bf16 sublane pack = 16)."""
    n = max(n, 1)
    if n >= 128:
        tiles = -(-n // 128)
        t = 128 * min(max(preferred // 128, 1), tiles)
    else:
        t = _round_up(n, 16)
    padded = _round_up(n, t)
    return padded, t


def _bucket_rows(cnt, max_rows):
    """Next power of two >= cnt (min 16), capped at the padded batch size."""
    b = 1 << max(4, int(cnt - 1).bit_length())
    return min(b, max_rows)


def _pad2(a, rows, cols):
    return jnp.pad(a, ((0, rows - a.shape[0]), (0, cols - a.shape[1])))


# ------------------------------ Pallas kernels ------------------------------

def _matmul_bias_kernel(x_ref, wt_ref, b_ref, o_ref, acc_ref):
    # o = x @ W^T + b, tiled over (M, N, K); K is the innermost reduction axis.
    k = pl.program_id(2)

    @pl.when(k == 0)
    def _init():
        acc_ref[...] = jnp.zeros_like(acc_ref)

    acc_ref[...] += jnp.dot(
        x_ref[...], wt_ref[...], preferred_element_type=jnp.float32
    )

    @pl.when(k == pl.num_programs(2) - 1)
    def _finalize():
        # Bias add once, in f32, in the epilogue only.
        o_ref[...] = (acc_ref[...] + b_ref[...]).astype(o_ref.dtype)


def _matmul_kernel(x_ref, wt_ref, o_ref, acc_ref):
    # o = x @ W^T (no bias), same (M, N, K) tiling.
    k = pl.program_id(2)

    @pl.when(k == 0)
    def _init():
        acc_ref[...] = jnp.zeros_like(acc_ref)

    acc_ref[...] += jnp.dot(
        x_ref[...], wt_ref[...], preferred_element_type=jnp.float32
    )

    @pl.when(k == pl.num_programs(2) - 1)
    def _finalize():
        o_ref[...] = acc_ref[...].astype(o_ref.dtype)


# ------------------------------ kernel wrappers ------------------------------

_COMPILER_PARAMS = pltpu.CompilerParams(
    dimension_semantics=("parallel", "parallel", "arbitrary"),
    # 48 MiB: safe headroom on v7x (64 MiB/TC physical), well above the 16/32
    # MiB defaults on v5e/v6e so the larger blocks still double-buffer.
    vmem_limit_bytes=48 * 1024 * 1024,
)
# NOTE: if profiling on v5e shows exposed DMA waits on the streamed weight
# operand, add pipeline_mode=pl.Buffered(3) to the wt BlockSpec below.


@partial(jax.jit, static_argnames=("tm", "tn", "tk"))
def linear_bias_f32(x, wt, b, *, tm, tn, tk):
    n, d = x.shape
    o = wt.shape[1]
    grid = (n // tm, o // tn, d // tk)
    return pl.pallas_call(
        _matmul_bias_kernel,
        out_shape=jax.ShapeDtypeStruct((n, o), jnp.float32),
        grid_spec=pltpu.PrefetchScalarGridSpec(
            num_scalar_prefetch=0,
            grid=grid,
            in_specs=[
                pl.BlockSpec((tm, tk), lambda i, j, k: (i, k)),
                pl.BlockSpec((tk, tn), lambda i, j, k: (k, j)),
                pl.BlockSpec((1, tn), lambda i, j, k: (0, j)),
            ],
            out_specs=pl.BlockSpec((tm, tn), lambda i, j, k: (i, j)),
            scratch_shapes=[pltpu.VMEM((tm, tn), jnp.float32)],
        ),
        compiler_params=_COMPILER_PARAMS,
    )(x, wt, b)


@partial(jax.jit, static_argnames=("tm", "tn", "tk", "out_dtype"))
def linear_nobias(x, wt, *, tm, tn, tk, out_dtype):
    n, d = x.shape
    o = wt.shape[1]
    grid = (n // tm, o // tn, d // tk)
    return pl.pallas_call(
        _matmul_kernel,
        out_shape=jax.ShapeDtypeStruct((n, o), jnp.dtype(out_dtype)),
        grid_spec=pltpu.PrefetchScalarGridSpec(
            num_scalar_prefetch=0,
            grid=grid,
            in_specs=[
                pl.BlockSpec((tm, tk), lambda i, j, k: (i, k)),
                pl.BlockSpec((tk, tn), lambda i, j, k: (k, j)),
            ],
            out_specs=pl.BlockSpec((tm, tn), lambda i, j, k: (i, j)),
            scratch_shapes=[pltpu.VMEM((tm, tn), jnp.float32)],
        ),
        compiler_params=_COMPILER_PARAMS,
    )(x, wt)


# ------------------------------ module wrapper -------------------------------

class AdaptiveSoftmaxPallas:
    def __init__(self, input_size, cutoff, key):
        self.input_size = input_size
        self.cutoff = list(cutoff)
        self.output_size = cutoff[0] + len(cutoff) - 1

        # Lane-dense padded dims + tile sizes (derived once per model config).
        self.dp, self.tk = _pick_dim_tile(input_size, 1024, 128)            # K
        self.op, self.tn_head = _pick_dim_tile(self.output_size, 512, 128,
                                               min_tiles=2)                 # head N

        keys = jax.random.split(key, 2 + 2 * (len(cutoff) - 1))

        # Head: Linear(input_size, output_size) with bias.
        head_w = (jax.random.normal(keys[0], (self.output_size, input_size))
                  * 0.1).astype(jnp.float32)
        self.head_w = head_w.astype(jnp.bfloat16)                    # (O, D)
        self.head_b = (jax.random.normal(keys[1], (self.output_size,))
                       * 0.1).astype(jnp.float32)                    # (O,)
        # Padded, pre-transposed kernel operands.
        self.head_wt_p = _pad2(self.head_w, self.op, self.dp).T      # (Dp, Op) bf16
        self.head_b_p = jnp.pad(self.head_b,
                                (0, self.op - self.output_size)).reshape(1, self.op)

        # Tails: Linear(D, D//4**i, bias=False) -> Linear(D//4**i, c[i+1]-c[i], False)
        self.tail_w = []   # unpadded bf16 weights (reference)
        self.tail_p = []   # (w1t_p, w2t_p, th, tnv) padded kernel operands + tiles
        for i in range(len(cutoff) - 1):
            hid = input_size // 4 ** i
            vsz = cutoff[i + 1] - cutoff[i]
            w1 = ((jax.random.normal(keys[2 + 2 * i], (hid, input_size)) * 0.1)
                  .astype(jnp.float32).astype(jnp.bfloat16))          # (H, D)
            w2 = ((jax.random.normal(keys[3 + 2 * i], (vsz, hid)) * 0.1)
                  .astype(jnp.float32).astype(jnp.bfloat16))          # (V, H)
            self.tail_w.append((w1, w2))

            # One tile `th` serves as the N tile of stage 1 and the K tile of
            # stage 2, so Hp is consistent between the two kernels.
            hp, th = _pick_dim_tile(hid, 512, 128)
            vp, tnv = _pick_dim_tile(vsz, 512, 128, min_tiles=2)
            w1t_p = _pad2(w1, hp, self.dp).T                          # (Dp, Hp)
            w2t_p = _pad2(w2, vp, hp).T                               # (Hp, Vp)
            self.tail_p.append((w1t_p, w2t_p, th, tnv))

        self.id = []

    def set_target(self, target):
        # Host-side dynamic-shape index computation, mirrors torch.nonzero.
        t = np.asarray(target)
        self.id = []
        for i in range(len(self.cutoff) - 1):
            mask = (t >= self.cutoff[i]) & (t < self.cutoff[i + 1])
            idx = np.nonzero(mask)[0]
            self.id.append(idx.astype(np.int32) if idx.size > 0 else None)

    def forward(self, x):
        n, d = x.shape
        np_rows, tm = _pick_rows(n)

        # Cast once to bf16, zero-pad to (Np, Dp); padding is exact (zeros).
        x_p = jnp.pad(x.astype(jnp.bfloat16),
                      ((0, np_rows - n), (0, self.dp - d)))

        head_p = linear_bias_f32(x_p, self.head_wt_p, self.head_b_p,
                                 tm=tm, tn=self.tn_head, tk=self.tk)
        output = [head_p[:n, :self.output_size]]

        for i, ids in enumerate(self.id):
            if ids is None:
                output.append(None)
                continue
            cnt = int(ids.shape[0])
            # Size tail work by cluster occupancy: bucket cnt to the next
            # power of two (min 16, capped at the padded batch) so the gather
            # and both tail matmuls only touch ~cnt rows, with a bounded
            # number of compile variants.
            rows_b = _bucket_rows(cnt, np_rows)
            rows_p, tm_t = _pick_rows(rows_b)
            ids_p = np.zeros((rows_p,), dtype=np.int32)
            ids_p[:cnt] = ids
            # TODO(synk): fuse this gather into the stage-1 kernel's input DMA
            # via PrefetchScalarGridSpec scalar-prefetched row ids instead of
            # materializing x_sel.
            x_sel = jnp.take(x_p, jnp.asarray(ids_p), axis=0)

            w1t_p, w2t_p, th, tnv = self.tail_p[i]
            # Stage 1: h = x_sel @ W1^T, computed exactly once per row tile,
            # materialized as a tiny bf16 (rows_p, Hp) intermediate.
            h = linear_nobias(x_sel, w1t_p, tm=tm_t, tn=th, tk=self.tk,
                              out_dtype="bfloat16")
            # Stage 2: o = h @ W2^T, standard (M, V, K=H) tiled matmul.
            out_p = linear_nobias(h, w2t_p, tm=tm_t, tn=tnv, tk=th,
                                  out_dtype="float32")
            vsz = self.cutoff[i + 1] - self.cutoff[i]
            output.append(out_p[:cnt, :vsz])
        return output

    # TODO(synk): log_prob (LogSoftmax path) and reset() (xavier init) are not
    # part of the benchmarked forward pass and are not implemented here.


# ------------------------------ reference (numpy) ----------------------------

def _to_f64(a):
    return np.asarray(jnp.asarray(a).astype(jnp.float32), dtype=np.float64)


def ref_forward(model, x):
    # Reference uses the same bf16-rounded parameters / activations so the
    # only remaining differences are accumulation order (f32 vs f64).
    xb = _to_f64(jnp.asarray(x).astype(jnp.bfloat16))
    hw = _to_f64(model.head_w)
    hb = np.asarray(model.head_b, dtype=np.float64)
    out = [xb @ hw.T + hb]
    for i, ids in enumerate(model.id):
        if ids is None:
            out.append(None)
            continue
        xs = xb[ids]
        w1 = _to_f64(model.tail_w[i][0])
        w2 = _to_f64(model.tail_w[i][1])
        h = xs @ w1.T
        # Kernel materializes the intermediate as bf16 before the second
        # matmul (deliberate deviation from PyTorch's fp32 intermediate).
        h = _to_f64(jnp.asarray(h.astype(np.float32)).astype(jnp.bfloat16))
        out.append(h @ w2.T)
    return out


# ----------------------------------- main ------------------------------------

if __name__ == "__main__":
    key = jax.random.PRNGKey(0)
    k_param, k_x, k_t = jax.random.split(key, 3)

    input_size = 32
    cutoff = [8, 16, 32]
    batch = 16

    model = AdaptiveSoftmaxPallas(input_size, cutoff, k_param)

    x = jax.random.normal(k_x, (batch, input_size), dtype=jnp.float32)
    target = np.asarray(jax.random.randint(k_t, (batch,), 0, cutoff[-1]))

    model.set_target(target)
    outs = model.forward(x)

    for o in outs:
        if o is not None:
            jax.block_until_ready(o)

    refs = ref_forward(model, x)
    for o, r in zip(outs, refs):
        if o is None:
            assert r is None
            continue
        np.testing.assert_allclose(np.asarray(o, dtype=np.float64), r,
                                   rtol=1e-3, atol=1e-3)

    print("KERNEL_OK")
</pallas_src>

<mosaic_0001>
module attributes {stable_mosaic.version = 11 : i64} {
  func.func @_matmul_bias_kernel(%arg0: i32, %arg1: i32, %arg2: i32, %arg3: memref<16x128xbf16, #tpu.memory_space<vmem>>, %arg4: memref<128x128xbf16, #tpu.memory_space<vmem>>, %arg5: memref<1x128xf32, #tpu.memory_space<vmem>>, %arg6: memref<16x128xf32, #tpu.memory_space<vmem>>, %arg7: memref<16x128xf32, #tpu.memory_space<vmem>>) attributes {dimension_semantics = [#tpu.dimension_semantics<parallel>, #tpu.dimension_semantics<parallel>, #tpu.dimension_semantics<arbitrary>], iteration_bounds = array<i64: 1, 1, 1>, scalar_prefetch = 0 : i64, scratch_operands = 1 : i64, tpu.core_type = #tpu.core_type<tc>, window_params = [{transform_indices = @transform_0, window_bounds = array<i64: 16, 128>}, {transform_indices = @transform_1, window_bounds = array<i64: 128, 128>}, {transform_indices = @transform_2, window_bounds = array<i64: 1, 128>}, {transform_indices = @transform_3, window_bounds = array<i64: 16, 128>}]} {
    %c0_i32 = arith.constant 0 : i32
    %0 = arith.cmpi eq, %arg2, %c0_i32 : i32
    %1 = arith.extui %0 : i1 to i32
    %c0_i32_0 = arith.constant 0 : i32
    %2 = arith.cmpi ne, %1, %c0_i32_0 : i32
    scf.if %2 {
      %cst_10 = arith.constant 0.000000e+00 : f32
      %12 = vector.broadcast %cst_10 : f32 to vector<16x128xf32>
      %c0_11 = arith.constant 0 : index
      %c0_12 = arith.constant 0 : index
      %13 = vector.load %arg7[%c0_11, %c0_12] : memref<16x128xf32, #tpu.memory_space<vmem>>, vector<16x128xf32>
      tpu.vector_store %arg7[%c0_11, %c0_12], %12 {strides = array<i32>} : memref<16x128xf32, #tpu.memory_space<vmem>>, vector<16x128xf32>,
    } else {
    }
    %c0 = arith.constant 0 : index
    %c0_1 = arith.constant 0 : index
    %3 = vector.load %arg7[%c0, %c0_1] : memref<16x128xf32, #tpu.memory_space<vmem>>, vector<16x128xf32>
    %c0_2 = arith.constant 0 : index
    %c0_3 = arith.constant 0 : index
    %4 = vector.load %arg3[%c0_2, %c0_3] : memref<16x128xbf16, #tpu.memory_space<vmem>>, vector<16x128xbf16>
    %c0_4 = arith.constant 0 : index
    %c0_5 = arith.constant 0 : index
    %5 = vector.load %arg4[%c0_4, %c0_5] : memref<128x128xbf16, #tpu.memory_space<vmem>>, vector<128x128xbf16>
    %cst = arith.constant dense<0.000000e+00> : vector<16x128xf32>
    %6 = tpu.matmul %4, %5, %cst {dimension_numbers = #tpu.dot_dimension_numbers<[1], [0], [0], [1], [0, 0, 1, 1], [], []>} : vector<16x128xbf16>, vector<128x128xbf16>, vector<16x128xf32> -> vector<16x128xf32>
    %7 = arith.addf %3, %6 : vector<16x128xf32>
    %c0_6 = arith.constant 0 : index
    %c0_7 = arith.constant 0 : index
    %8 = vector.load %arg7[%c0_6, %c0_7] : memref<16x128xf32, #tpu.memory_space<vmem>>, vector<16x128xf32>
    tpu.vector_store %arg7[%c0_6, %c0_7], %7 {strides = array<i32>} : memref<16x128xf32, #tpu.memory_space<vmem>>, vector<16x128xf32>,
    %c0_i32_8 = arith.constant 0 : i32
    %9 = arith.cmpi eq, %arg2, %c0_i32_8 : i32
    %10 = arith.extui %9 : i1 to i32
    %c0_i32_9 = arith.constant 0 : i32
    %11 = arith.cmpi ne, %10, %c0_i32_9 : i32
    scf.if %11 {
      %c0_10 = arith.constant 0 : index
      %c0_11 = arith.constant 0 : index
      %12 = vector.load %arg7[%c0_10, %c0_11] : memref<16x128xf32, #tpu.memory_space<vmem>>, vector<16x128xf32>
      %c0_12 = arith.constant 0 : index
      %c0_13 = arith.constant 0 : index
      %13 = vector.load %arg5[%c0_12, %c0_13] : memref<1x128xf32, #tpu.memory_space<vmem>>, vector<1x128xf32>
      %14 = vector.broadcast %13 : vector<1x128xf32> to vector<16x128xf32>
      %15 = arith.addf %12, %14 : vector<16x128xf32>
      %c0_14 = arith.constant 0 : index
      %c0_15 = arith.constant 0 : index
      %16 = vector.load %arg6[%c0_14, %c0_15] : memref<16x128xf32, #tpu.memory_space<vmem>>, vector<16x128xf32>
      tpu.vector_store %arg6[%c0_14, %c0_15], %15 {strides = array<i32>} : memref<16x128xf32, #tpu.memory_space<vmem>>, vector<16x128xf32>,
    } else {
    }
    return
  }
  func.func @transform_0(%arg0: i32, %arg1: i32, %arg2: i32) -> (i32, i32) {
    %c0_i32 = arith.constant 0 : i32
    return %arg0, %arg2 : i32, i32
  }
  func.func @transform_1(%arg0: i32, %arg1: i32, %arg2: i32) -> (i32, i32) {
    %c0_i32 = arith.constant 0 : i32
    return %arg2, %arg1 : i32, i32
  }
  func.func @transform_2(%arg0: i32, %arg1: i32, %arg2: i32) -> (i32, i32) {
    %c0_i32 = arith.constant 0 : i32
    %c0_i32_0 = arith.constant 0 : i32
    return %c0_i32, %arg1 : i32, i32
  }
  func.func @transform_3(%arg0: i32, %arg1: i32, %arg2: i32) -> (i32, i32) {
    %c0_i32 = arith.constant 0 : i32
    return %arg0, %arg1 : i32, i32
  }
}

</mosaic_0001>

<bundles_post_ra>
// kernel: linear_bias_f32.1
= control target key start
LH: loop header
LB: loop body
LE: loop exit
PB: predicated region body
PF: predicated region fallthrough
CT: control target
= control target key end

     0   :  { %8 = vsyncpa [#allocation4], 0  ;;  %s400_s0 = inlined_call_operand.hbm [shape: bf16[16,128], index: 0, kind: input, shape index: {}]   ;;  %s401_s1 = inlined_call_operand.hbm [shape: bf16[128,128], index: 1, kind: input, shape index: {}]   ;;  %s402_s2 = inlined_call_operand.vmem [shape: f32[1,128], index: 2, kind: input, shape index: {}]   ;;  %s403_s3 = inlined_call_operand.hbm [shape: f32[16,128], index: 3, kind: output, shape index: {}]  }
   0x1   :  { %9 = vsyncpa [#allocation7], 0 }
   0x2   :  { %10 = vsyncpa [#allocation5], 0  ;;  %s332_s12 = smov [#allocation3]   ;;  %s260_s16 = scalar_lea.hbm %s400_s0, 128 }
   0x3   :  { %s16_s13 = sshll.u32 %s332_s12, 4  ;;  %p261_p0 = scmp.ne.s32.totalorder %s400_s0, %s260_s16  ;;  %s17_s13 = int_to_ptr.vmem [resolvable:$true] %s16_s13 }
   0x4   :  { %p264_p1 = scmp.lt.u32.totalorder %s260_s16, %s400_s0 }
   0x6   :  { %p266_p2 = pnand %p264_p1, %p261_p0 }
   0x8   :  { %269 = shalt.err (!%p266_p2)
}
   0x9   :  { %s270_s21 = scalar_lea.vmem %s17_s13, 128  ;;  %p275_p4 = scmp.lt.s32.totalorder %s17_s13, %s17_s13 }
   0xa   :  { %p271_p3 = scmp.ne.s32.totalorder %s17_s13, %s270_s21  ;;  %p276_p5 = scmp.lt.s32.totalorder %s270_s21, %s270_s21 }
   0xc   :  { %p277_p6 = por %p276_p5, %p275_p4 }
   0xe   :  { %p278_p7 = pnand %p277_p6, %p271_p3 }
  0x10   :  { %281 = shalt.err (!%p278_p7)
}
  0x11   :  { %s333_s22 = smov 64   ;;  %s334_s23 = smov 4  }
  0x12   :  { %22 = dma.hbm_to_vmem [thread:$0]  %s400_s0, 128, %s17_s13, [#allocation4], %s333_s22, %s333_s22, %s334_s23  }
  0x13   :  { %s335_s26 = smov [#allocation6]   ;;  %s282_s30 = scalar_lea.hbm %s401_s1, 1024 }
  0x14   :  { %s28_s27 = sshll.u32 %s335_s26, 4  ;;  %p283_p8 = scmp.ne.s32.totalorder %s401_s1, %s282_s30  ;;  %s29_s27 = int_to_ptr.vmem [resolvable:$true] %s28_s27 }
  0x15   :  { %p286_p9 = scmp.lt.u32.totalorder %s282_s30, %s401_s1 }
  0x17   :  { %p288_p10 = pnand %p286_p9, %p283_p8 }
  0x19   :  { %291 = shalt.err (!%p288_p10)
}
  0x1a   :  { %s292_s8 = scalar_lea.vmem %s29_s27, 1024  ;;  %p297_p12 = scmp.lt.s32.totalorder %s29_s27, %s29_s27 }
  0x1b   :  { %p293_p11 = scmp.ne.s32.totalorder %s29_s27, %s292_s8  ;;  %p298_p13 = scmp.lt.s32.totalorder %s292_s8, %s292_s8 }
  0x1d   :  { %p299_p0 = por %p298_p13, %p297_p12 }
  0x1f   :  { %p300_p1 = pnand %p299_p0, %p293_p11 }
  0x21   :  { %303 = shalt.err (!%p300_p1)
}
  0x22   :  { %34 = dma.hbm_to_vmem [thread:$0]  %s401_s1, 1024, %s29_s27, [#allocation7], %s333_s22, %s333_s22, %s334_s23  }
  0x23   :  { %326 = dma.done.wait [#allocation4], 128  }
  0x24   :  { %327 = vsyncadd [#allocation4], 4294967168 }
  0x25   :  { %328 = dma.done.wait [#allocation7], 1024  }
  0x26   :  { %329 = vsyncadd [#allocation7], 4294966272  ;;  %v336_v0 = vmov 0.0   ;;  %vm337_vm0 = vmmov 0   ;;  %v251_v1 = vld [vmem:[#allocation6] sm:$0xff]   ;;  %v252_v2 = vld [vmem:[#allocation6 + $0x8] sm:$0xff]  }
  0x27   :  { %222 = vmatprep.subr.bf16.mxu0 %v336_v0  ;;  %238 = vmatprep.mubr.msk.bf16.mxu0 %vm337_vm0, %v336_v0  ;;  %v253_v3 = vld [vmem:[#allocation6 + $0x10] sm:$0xff]   ;;  %v254_v4 = vld [vmem:[#allocation6 + $0x18] sm:$0xff]   ;;  %v255_v5 = vld [vmem:[#allocation6 + $0x20] sm:$0xff]   ;;  %s338_s11 = smov [#allocation8]  }
  0x28   :  { %223 = vmatpush3.bf16.msra.mxu0 %v251_v1  ;;  %v256_v6 = vld [vmem:[#allocation6 + $0x28] sm:$0xff]   ;;  %v257_v7 = vld [vmem:[#allocation6 + $0x30] sm:$0xff]   ;;  %v258_v8 = vld [vmem:[#allocation6 + $0x38] sm:$0xff]   ;;  %s190_s12 = sshll.u32 %s338_s11, 4  ;;  %s191_s12 = int_to_ptr.vmem [resolvable:$true] %s190_s12 }
  0x29   :  { %224 = vmatprep.subr.bf16.mxu0 %v336_v0  ;;  %v259_v9 = vld [vmem:[#allocation3] sm:$0xff]   ;;  %s304_s13 = scalar_lea.vmem %s191_s12, 256  ;;  %p309_p3 = scmp.lt.s32.totalorder %s191_s12, %s191_s12 }
  0x2a   :  { %v212_v10 = vld [vmem:[%s402_s2] ss:$0 sm:$0xff]  ;;  %p305_p2 = scmp.ne.s32.totalorder %s191_s12, %s304_s13  ;;  %p310_p4 = scmp.lt.s32.totalorder %s304_s13, %s304_s13 }
  0x2c   :  { %225 = vmatpush3.bf16.msra.mxu0 %v252_v2  ;;  %p311_p5 = por %p310_p4, %p309_p3 }
  0x2d   :  { %226 = vmatprep.subr.bf16.mxu0 %v336_v0 }
  0x2e   :  { %p312_p6 = pnand %p311_p5, %p305_p2 }
  0x30   :  { %227 = vmatpush3.bf16.msra.mxu0 %v253_v3 }
  0x31   :  { %228 = vmatprep.subr.bf16.mxu0 %v336_v0 }
  0x34   :  { %229 = vmatpush3.bf16.msra.mxu0 %v254_v4 }
  0x35   :  { %230 = vmatprep.subr.bf16.mxu0 %v336_v0 }
  0x38   :  { %231 = vmatpush3.bf16.msra.mxu0 %v255_v5 }
  0x39   :  { %232 = vmatprep.subr.bf16.mxu0 %v336_v0 }
  0x3c   :  { %233 = vmatpush3.bf16.msra.mxu0 %v256_v6 }
  0x3d   :  { %234 = vmatprep.subr.bf16.mxu0 %v336_v0 }
  0x40   :  { %235 = vmatpush3.bf16.msra.mxu0 %v257_v7 }
  0x41   :  { %236 = vmatprep.subr.bf16.mxu0 %v336_v0 }
  0x44   :  { %237 = vmatpush3.bf16.msra.mxu0 %v258_v8 }
  0x47   :  { %239 = vmatmul.mubr.bf16.vlgmr.msra.gmra.mrb[0].mxu0 %v259_v9 }
 0x11a   :  { %v158_v11 = vpop.f32.mrb[0].mxu0 }
 0x11b   :  { %v181_v12 = vadd.f32 %v212_v10, %v158_v11  ;;  %v240_v13 = vpop.f32.mrb[1].mxu0 }
 0x11c   :  { %v161_v14 = vpop.f32.mrb[2].mxu0 }
 0x11d   :  { %183 = vst [vmem:[#allocation8] sm:$0xff] %v181_v12  ;;  %v182_v15 = vadd.f32 %v212_v10, %v161_v14  ;;  %v241_v16 = vpop.f32.mrb[3].mxu0 }
 0x11f   :  { %184 = vst [vmem:[#allocation8 + $0x8] sm:$0xff] %v182_v15 }
 0x120   :  { %315 = shalt.err (!%p312_p6)
}
 0x121   :  { %s316_s15 = scalar_lea.hbm %s403_s3, 256 }
 0x122   :  { %p317_p7 = scmp.ne.s32.totalorder %s403_s3, %s316_s15  ;;  %p320_p8 = scmp.lt.u32.totalorder %s316_s15, %s403_s3 }
 0x124   :  { %p322_p9 = pnand %p320_p8, %p317_p7 }
 0x126   :  { %325 = shalt.err (!%p322_p9)
}
 0x127   :  { %s339_s20 = smov 128   ;;  %s340_s21 = smov 8  }
 0x128   :  { %196 = dma.vmem_to_hbm [thread:$0]  %s191_s12, 256, %s403_s3, [#allocation5], %s339_s20, %s339_s20, %s340_s21  }
 0x129   :  { %330 = dma.done.wait [#allocation5], 256  }
 0x12a   :  { %331 = vsyncadd [#allocation5], 4294967040 }
 0x12b   :  { %200 = vsyncpa [#allocation4], 1 }
 0x12c   :  { %201 = vsyncpa [#allocation7], 1 }
 0x12d   :  { %202 = vsyncpa [#allocation5], 1 }

</bundles_post_ra>
